<compile_context>
chip_gen: v7x
topology: tpu7x:2x2x1
jax: 0.10.0
libtpu: 0.0.40
codegen_flags: <defaults>
</compile_context>

<pallas_src>
from enum import Enum
from functools import partial

import jax
import jax.numpy as jnp
from jax.experimental import pallas as pl
from jax.experimental.pallas import tpu as pltpu


class RealityLayer(Enum):
    PHYSICAL = "physical"
    QUANTUM = "quantum"
    INFORMATION = "information"
    CONSCIOUSNESS = "consciousness"
    TEMPORAL = "temporal"
    SPATIAL = "spatial"
    CAUSAL = "causal"
    PROBABILISTIC = "probabilistic"


OBS_DIM = 64          # per-layer observer width (8 layers -> 512 fused lanes)
MAX_BLOCK_B = 256     # row tile cap: multiple of 128 -> full MXU M-tiles; keeps
                      # x/out double buffers at ~2 MB, safe on every generation.


def _block_rows(batch):
    """Row-tile size: whole (8-aligned) batch if small, else 256-row blocks."""
    padded = ((batch + 7) // 8) * 8
    return padded if padded <= MAX_BLOCK_B else MAX_BLOCK_B


def _reality_observer_kernel(
    x_ref,
    w1_ref, b1_ref, w2_ref, b2_ref, w3_ref, b3_ref,
    wt_ref, bt_ref,
    out_ref,
):
    # Trunk: 3x (Linear + ReLU).  bf16 operands on the MXU, f32 accumulate,
    # f32 elementwise (bias add / ReLU) on the VPU.
    h = x_ref[...].astype(jnp.bfloat16)
    for w_ref, b_ref in ((w1_ref, b1_ref), (w2_ref, b2_ref), (w3_ref, b3_ref)):
        acc = jnp.dot(h, w_ref[...], preferred_element_type=jnp.float32) + b_ref[...]
        h = jnp.maximum(acc, 0.0).astype(jnp.bfloat16)

    # Folded tail: out_proj(V) followed by all 8 observer heads, pre-composed
    # on the host into a single (hidden, 8*64) matmul + bias, then tanh.
    obs = jnp.dot(h, wt_ref[...], preferred_element_type=jnp.float32) + bt_ref[...]
    out_ref[...] = jnp.tanh(obs)


def init_params(key, input_size=512, hidden_size=256, num_layers=3):
    """Deterministic synthetic init (shapes mirror the PyTorch module).

    Linear weights are stored transposed vs PyTorch, i.e. (in, out), so each
    layer computes y = x @ W + b.
    """
    def linear(k, fan_in, fan_out):
        kw, kb = jax.random.split(k)
        bound = 1.0 / jnp.sqrt(fan_in)
        w = jax.random.uniform(kw, (fan_in, fan_out), jnp.float32, -bound, bound)
        b = jax.random.uniform(kb, (1, fan_out), jnp.float32, -bound, bound)
        return w, b

    keys = jax.random.split(key, num_layers + 2 + len(RealityLayer))
    trunk = []
    for i in range(num_layers):
        fan_in = input_size if i == 0 else hidden_size
        trunk.append(linear(keys[i], fan_in, hidden_size))
    # MHA: for a length-1 sequence only the V and out_proj projections matter.
    wv, bv = linear(keys[num_layers], hidden_size, hidden_size)
    wo, bo = linear(keys[num_layers + 1], hidden_size, hidden_size)
    observers = {}
    for j, layer in enumerate(RealityLayer):
        observers[layer.value] = linear(keys[num_layers + 2 + j], hidden_size, OBS_DIM)
    return {"trunk": trunk, "attn_v": (wv, bv), "attn_out": (wo, bo),
            "observers": observers}


def pack_params(params):
    """Host-side one-time packing.

    * Fuses the 8 observer heads into one (hidden, 512) matrix.
    * Algebraically folds V-proj -> out_proj -> observers (no nonlinearity in
      between) into W_tail / b_tail, computed in f32 on the host.
    * Casts weights to bf16 (MXU operand dtype); biases stay f32.
    """
    (w1, b1), (w2, b2), (w3, b3) = params["trunk"]
    wv, bv = params["attn_v"]
    wo, bo = params["attn_out"]
    wobs = jnp.concatenate(
        [params["observers"][l.value][0] for l in RealityLayer], axis=1)
    bobs = jnp.concatenate(
        [params["observers"][l.value][1] for l in RealityLayer], axis=1)

    w_tail = wv @ wo @ wobs                    # (hidden, 8*OBS_DIM), f32
    b_tail = (bv @ wo + bo) @ wobs + bobs      # (1, 8*OBS_DIM), f32

    bf = lambda w: w.astype(jnp.bfloat16)
    return (bf(w1), b1, bf(w2), b2, bf(w3), b3, bf(w_tail), b_tail)


@partial(jax.jit, static_argnames=("block_b",))
def _run_kernel(x, w1, b1, w2, b2, w3, b3, wt, bt, *, block_b):
    batch, input_size = x.shape
    n_obs = wt.shape[1]
    num_blocks = batch // block_b

    def resident(arr):
        # Full-array block with a constant index_map -> loaded into VMEM once
        # and reused by every grid step.
        return pl.BlockSpec(arr.shape, lambda i: (0, 0))

    grid_spec = pltpu.PrefetchScalarGridSpec(
        num_scalar_prefetch=0,
        grid=(num_blocks,),
        in_specs=[
            pl.BlockSpec((block_b, input_size), lambda i: (i, 0)),
            resident(w1), resident(b1),
            resident(w2), resident(b2),
            resident(w3), resident(b3),
            resident(wt), resident(bt),
        ],
        out_specs=pl.BlockSpec((block_b, n_obs), lambda i: (i, 0)),
    )
    return pl.pallas_call(
        _reality_observer_kernel,
        out_shape=jax.ShapeDtypeStruct((batch, n_obs), jnp.float32),
        grid_spec=grid_spec,
        compiler_params=pltpu.CompilerParams(
            dimension_semantics=("parallel",)),
    )(x, w1, b1, w2, b2, w3, b3, wt, bt)


def reality_observer_forward(x, packed_params):
    """Mirrors RealityObserver.forward: returns {layer_name: (batch, 64)}."""
    batch = x.shape[0]
    block_b = _block_rows(batch)
    pad = (-batch) % block_b
    if pad:  # only pad the tail block when actually needed
        x = jnp.pad(x, ((0, pad), (0, 0)))
    obs_flat = _run_kernel(x, *packed_params, block_b=block_b)[:batch]
    # Single lane-dense reshape of the fused slab; per-layer views come from it.
    obs3 = obs_flat.reshape(batch, len(RealityLayer), OBS_DIM)
    return {layer.value: obs3[:, j] for j, layer in enumerate(RealityLayer)}


def _reference_forward(x, packed_params):
    """Plain-JAX reference using the same packed (bf16) params as the kernel."""
    (w1, b1, w2, b2, w3, b3, wt, bt) = packed_params
    h = x.astype(jnp.bfloat16)
    for w, b in ((w1, b1), (w2, b2), (w3, b3)):
        h = jnp.maximum(
            jnp.dot(h, w, preferred_element_type=jnp.float32) + b, 0.0
        ).astype(jnp.bfloat16)
    return jnp.tanh(jnp.dot(h, wt, preferred_element_type=jnp.float32) + bt)


def _check(batch, packed, key):
    x = jax.random.normal(key, (batch, 512), dtype=jnp.float32)
    observations = jax.block_until_ready(reality_observer_forward(x, packed))

    assert set(observations.keys()) == {l.value for l in RealityLayer}
    for v in observations.values():
        assert v.shape == (batch, OBS_DIM) and v.dtype == jnp.float32
        assert bool(jnp.all(jnp.abs(v) <= 1.0))

    ref = _reference_forward(x, packed)
    got = jnp.concatenate([observations[l.value] for l in RealityLayer], axis=1)
    assert bool(jnp.allclose(got, ref, atol=5e-3)), "mismatch vs reference"


if __name__ == "__main__":
    input_size, hidden_size = 512, 256

    key = jax.random.PRNGKey(0)
    k_param, k_x1, k_x2 = jax.random.split(key, 3)

    params = init_params(k_param, input_size, hidden_size)
    packed = pack_params(params)

    # Small batch: single block, exercises tail padding (20 -> 24 rows).
    _check(20, packed, k_x1)
    # Larger batch: multi-block grid path (300 -> 512 rows = 2 x 256 blocks).
    _check(300, packed, k_x2)

    print("KERNEL_OK")
</pallas_src>

<mosaic_0001>
module attributes {stable_mosaic.version = 11 : i64} {
  func.func @_reality_observer_kernel(%arg0: i32, %arg1: memref<24x512xf32, #tpu.memory_space<vmem>>, %arg2: memref<512x256xbf16, #tpu.memory_space<vmem>>, %arg3: memref<1x256xf32, #tpu.memory_space<vmem>>, %arg4: memref<256x256xbf16, #tpu.memory_space<vmem>>, %arg5: memref<1x256xf32, #tpu.memory_space<vmem>>, %arg6: memref<256x256xbf16, #tpu.memory_space<vmem>>, %arg7: memref<1x256xf32, #tpu.memory_space<vmem>>, %arg8: memref<256x512xbf16, #tpu.memory_space<vmem>>, %arg9: memref<1x512xf32, #tpu.memory_space<vmem>>, %arg10: memref<24x512xf32, #tpu.memory_space<vmem>>) attributes {dimension_semantics = [#tpu.dimension_semantics<parallel>], iteration_bounds = array<i64: 1>, scalar_prefetch = 0 : i64, scratch_operands = 0 : i64, tpu.core_type = #tpu.core_type<tc>, window_params = [{transform_indices = @transform_0, window_bounds = array<i64: 24, 512>}, {pipeline_mode = #tpu.pipeline_mode<synchronous>, transform_indices = @transform_1, window_bounds = array<i64: 512, 256>}, {pipeline_mode = #tpu.pipeline_mode<synchronous>, transform_indices = @transform_2, window_bounds = array<i64: 1, 256>}, {pipeline_mode = #tpu.pipeline_mode<synchronous>, transform_indices = @transform_3, window_bounds = array<i64: 256, 256>}, {pipeline_mode = #tpu.pipeline_mode<synchronous>, transform_indices = @transform_4, window_bounds = array<i64: 1, 256>}, {pipeline_mode = #tpu.pipeline_mode<synchronous>, transform_indices = @transform_5, window_bounds = array<i64: 256, 256>}, {pipeline_mode = #tpu.pipeline_mode<synchronous>, transform_indices = @transform_6, window_bounds = array<i64: 1, 256>}, {pipeline_mode = #tpu.pipeline_mode<synchronous>, transform_indices = @transform_7, window_bounds = array<i64: 256, 512>}, {pipeline_mode = #tpu.pipeline_mode<synchronous>, transform_indices = @transform_8, window_bounds = array<i64: 1, 512>}, {transform_indices = @transform_9, window_bounds = array<i64: 24, 512>}]} {
    %c0 = arith.constant 0 : index
    %c0_0 = arith.constant 0 : index
    %0 = vector.load %arg1[%c0, %c0_0] : memref<24x512xf32, #tpu.memory_space<vmem>>, vector<24x512xf32>
    %1 = arith.truncf %0 : vector<24x512xf32> to vector<24x512xbf16>
    %c0_1 = arith.constant 0 : index
    %c0_2 = arith.constant 0 : index
    %2 = vector.load %arg2[%c0_1, %c0_2] : memref<512x256xbf16, #tpu.memory_space<vmem>>, vector<512x256xbf16>
    %cst = arith.constant dense<0.000000e+00> : vector<24x256xf32>
    %3 = tpu.matmul %1, %2, %cst {dimension_numbers = #tpu.dot_dimension_numbers<[1], [0], [0], [1], [0, 0, 1, 1], [], []>} : vector<24x512xbf16>, vector<512x256xbf16>, vector<24x256xf32> -> vector<24x256xf32>
    %c0_3 = arith.constant 0 : index
    %c0_4 = arith.constant 0 : index
    %4 = vector.load %arg3[%c0_3, %c0_4] : memref<1x256xf32, #tpu.memory_space<vmem>>, vector<1x256xf32>
    %5 = vector.broadcast %4 : vector<1x256xf32> to vector<24x256xf32>
    %6 = arith.addf %3, %5 : vector<24x256xf32>
    %cst_5 = arith.constant 0.000000e+00 : f32
    %7 = vector.broadcast %cst_5 : f32 to vector<24x256xf32>
    %8 = arith.maximumf %6, %7 : vector<24x256xf32>
    %9 = arith.truncf %8 : vector<24x256xf32> to vector<24x256xbf16>
    %c0_6 = arith.constant 0 : index
    %c0_7 = arith.constant 0 : index
    %10 = vector.load %arg4[%c0_6, %c0_7] : memref<256x256xbf16, #tpu.memory_space<vmem>>, vector<256x256xbf16>
    %cst_8 = arith.constant dense<0.000000e+00> : vector<24x256xf32>
    %11 = tpu.matmul %9, %10, %cst_8 {dimension_numbers = #tpu.dot_dimension_numbers<[1], [0], [0], [1], [0, 0, 1, 1], [], []>} : vector<24x256xbf16>, vector<256x256xbf16>, vector<24x256xf32> -> vector<24x256xf32>
    %c0_9 = arith.constant 0 : index
    %c0_10 = arith.constant 0 : index
    %12 = vector.load %arg5[%c0_9, %c0_10] : memref<1x256xf32, #tpu.memory_space<vmem>>, vector<1x256xf32>
    %13 = vector.broadcast %12 : vector<1x256xf32> to vector<24x256xf32>
    %14 = arith.addf %11, %13 : vector<24x256xf32>
    %cst_11 = arith.constant 0.000000e+00 : f32
    %15 = vector.broadcast %cst_11 : f32 to vector<24x256xf32>
    %16 = arith.maximumf %14, %15 : vector<24x256xf32>
    %17 = arith.truncf %16 : vector<24x256xf32> to vector<24x256xbf16>
    %c0_12 = arith.constant 0 : index
    %c0_13 = arith.constant 0 : index
    %18 = vector.load %arg6[%c0_12, %c0_13] : memref<256x256xbf16, #tpu.memory_space<vmem>>, vector<256x256xbf16>
    %cst_14 = arith.constant dense<0.000000e+00> : vector<24x256xf32>
    %19 = tpu.matmul %17, %18, %cst_14 {dimension_numbers = #tpu.dot_dimension_numbers<[1], [0], [0], [1], [0, 0, 1, 1], [], []>} : vector<24x256xbf16>, vector<256x256xbf16>, vector<24x256xf32> -> vector<24x256xf32>
    %c0_15 = arith.constant 0 : index
    %c0_16 = arith.constant 0 : index
    %20 = vector.load %arg7[%c0_15, %c0_16] : memref<1x256xf32, #tpu.memory_space<vmem>>, vector<1x256xf32>
    %21 = vector.broadcast %20 : vector<1x256xf32> to vector<24x256xf32>
    %22 = arith.addf %19, %21 : vector<24x256xf32>
    %cst_17 = arith.constant 0.000000e+00 : f32
    %23 = vector.broadcast %cst_17 : f32 to vector<24x256xf32>
    %24 = arith.maximumf %22, %23 : vector<24x256xf32>
    %25 = arith.truncf %24 : vector<24x256xf32> to vector<24x256xbf16>
    %c0_18 = arith.constant 0 : index
    %c0_19 = arith.constant 0 : index
    %26 = vector.load %arg8[%c0_18, %c0_19] : memref<256x512xbf16, #tpu.memory_space<vmem>>, vector<256x512xbf16>
    %cst_20 = arith.constant dense<0.000000e+00> : vector<24x512xf32>
    %27 = tpu.matmul %25, %26, %cst_20 {dimension_numbers = #tpu.dot_dimension_numbers<[1], [0], [0], [1], [0, 0, 1, 1], [], []>} : vector<24x256xbf16>, vector<256x512xbf16>, vector<24x512xf32> -> vector<24x512xf32>
    %c0_21 = arith.constant 0 : index
    %c0_22 = arith.constant 0 : index
    %28 = vector.load %arg9[%c0_21, %c0_22] : memref<1x512xf32, #tpu.memory_space<vmem>>, vector<1x512xf32>
    %29 = vector.broadcast %28 : vector<1x512xf32> to vector<24x512xf32>
    %30 = arith.addf %27, %29 : vector<24x512xf32>
    %31 = math.tanh %30 : vector<24x512xf32>
    %c0_23 = arith.constant 0 : index
    %c0_24 = arith.constant 0 : index
    %32 = vector.load %arg10[%c0_23, %c0_24] : memref<24x512xf32, #tpu.memory_space<vmem>>, vector<24x512xf32>
    tpu.vector_store %arg10[%c0_23, %c0_24], %31 {strides = array<i32>} : memref<24x512xf32, #tpu.memory_space<vmem>>, vector<24x512xf32>,
    return
  }
  func.func @transform_0(%arg0: i32) -> (i32, i32) {
    %c0_i32 = arith.constant 0 : i32
    %c0_i32_0 = arith.constant 0 : i32
    return %arg0, %c0_i32 : i32, i32
  }
  func.func @transform_1(%arg0: i32) -> (i32, i32) {
    %c0_i32 = arith.constant 0 : i32
    %c0_i32_0 = arith.constant 0 : i32
    %c0_i32_1 = arith.constant 0 : i32
    return %c0_i32, %c0_i32_0 : i32, i32
  }
  func.func @transform_2(%arg0: i32) -> (i32, i32) {
    %c0_i32 = arith.constant 0 : i32
    %c0_i32_0 = arith.constant 0 : i32
    %c0_i32_1 = arith.constant 0 : i32
    return %c0_i32, %c0_i32_0 : i32, i32
  }
  func.func @transform_3(%arg0: i32) -> (i32, i32) {
    %c0_i32 = arith.constant 0 : i32
    %c0_i32_0 = arith.constant 0 : i32
    %c0_i32_1 = arith.constant 0 : i32
    return %c0_i32, %c0_i32_0 : i32, i32
  }
  func.func @transform_4(%arg0: i32) -> (i32, i32) {
    %c0_i32 = arith.constant 0 : i32
    %c0_i32_0 = arith.constant 0 : i32
    %c0_i32_1 = arith.constant 0 : i32
    return %c0_i32, %c0_i32_0 : i32, i32
  }
  func.func @transform_5(%arg0: i32) -> (i32, i32) {
    %c0_i32 = arith.constant 0 : i32
    %c0_i32_0 = arith.constant 0 : i32
    %c0_i32_1 = arith.constant 0 : i32
    return %c0_i32, %c0_i32_0 : i32, i32
  }
  func.func @transform_6(%arg0: i32) -> (i32, i32) {
    %c0_i32 = arith.constant 0 : i32
    %c0_i32_0 = arith.constant 0 : i32
    %c0_i32_1 = arith.constant 0 : i32
    return %c0_i32, %c0_i32_0 : i32, i32
  }
  func.func @transform_7(%arg0: i32) -> (i32, i32) {
    %c0_i32 = arith.constant 0 : i32
    %c0_i32_0 = arith.constant 0 : i32
    %c0_i32_1 = arith.constant 0 : i32
    return %c0_i32, %c0_i32_0 : i32, i32
  }
  func.func @transform_8(%arg0: i32) -> (i32, i32) {
    %c0_i32 = arith.constant 0 : i32
    %c0_i32_0 = arith.constant 0 : i32
    %c0_i32_1 = arith.constant 0 : i32
    return %c0_i32, %c0_i32_0 : i32, i32
  }
  func.func @transform_9(%arg0: i32) -> (i32, i32) {
    %c0_i32 = arith.constant 0 : i32
    %c0_i32_0 = arith.constant 0 : i32
    return %arg0, %c0_i32 : i32, i32
  }
}

</mosaic_0001>

<bundles_post_ra>
// kernel: _run_kernel.1
= control target key start
LH: loop header
LB: loop body
LE: loop exit
PB: predicated region body
PF: predicated region fallthrough
CT: control target
= control target key end

     0   :  { %14 = vsyncpa [#allocation3], 0  ;;  %s2559_s0 = inlined_call_operand.hbm [shape: f32[24,512], index: 0, kind: input, shape index: {}]   ;;  %s2560_s1 = inlined_call_operand.hbm [shape: bf16[512,256], index: 1, kind: input, shape index: {}]   ;;  %s2561_s2 = inlined_call_operand.vmem [shape: f32[1,256], index: 2, kind: input, shape index: {}]   ;;  %s2562_s3 = inlined_call_operand.hbm [shape: bf16[256,256], index: 3, kind: input, shape index: {}]   ;;  %s2563_s4 = inlined_call_operand.vmem [shape: f32[1,256], index: 4, kind: input, shape index: {}]   ;;  %s2564_s5 = inlined_call_operand.hbm [shape: bf16[256,256], index: 5, kind: input, shape index: {}]   ;;  %s2565_s6 = inlined_call_operand.vmem [shape: f32[1,256], index: 6, kind: input, shape index: {}]   ;;  %s2566_s7 = inlined_call_operand.hbm [shape: bf16[256,512], index: 7, kind: input, shape index: {}]   ;;  %s2567_s8 = inlined_call_operand.vmem [shape: f32[1,512], index: 8, kind: input, shape index: {}]   ;;  %s2568_s9 = inlined_call_operand.hbm [shape: f32[24,512], index: 9, kind: output, shape index: {}]  }
   0x1   :  { %15 = vsyncpa [#allocation6], 0 }
   0x2   :  { %16 = vsyncpa [#allocation9], 0 }
   0x3   :  { %17 = vsyncpa [#allocation4], 0  ;;  %s2380_s30 = smov [#allocation5]   ;;  %s2240_s13 = scalar_lea.hbm %s2560_s1, 8192 }
   0x4   :  { %s35_s10 = sshll.u32 %s2380_s30, 4  ;;  %p2241_p0 = scmp.ne.s32.totalorder %s2560_s1, %s2240_s13  ;;  %s36_s10 = int_to_ptr.vmem [resolvable:$true] %s35_s10 }
   0x5   :  { %p2244_p1 = scmp.lt.u32.totalorder %s2240_s13, %s2560_s1 }
   0x7   :  { %p2246_p2 = pnand %p2244_p1, %p2241_p0 }
   0x9   :  { %2249 = shalt.err (!%p2246_p2)
}
   0xa   :  { %s2250_s18 = scalar_lea.vmem %s36_s10, 8192  ;;  %p2255_p4 = scmp.lt.s32.totalorder %s36_s10, %s36_s10 }
   0xb   :  { %p2251_p3 = scmp.ne.s32.totalorder %s36_s10, %s2250_s18  ;;  %p2256_p5 = scmp.lt.s32.totalorder %s2250_s18, %s2250_s18 }
   0xd   :  { %p2257_p6 = por %p2256_p5, %p2255_p4 }
   0xf   :  { %p2258_p7 = pnand %p2257_p6, %p2251_p3 }
  0x11   :  { %2261 = shalt.err (!%p2258_p7)
}
  0x12   :  { %s2381_s19 = smov 128   ;;  %s2382_s20 = smov 8  }
  0x13   :  { %41 = dma.hbm_to_vmem [thread:$0]  %s2560_s1, 8192, %s36_s10, [#allocation6], %s2381_s19, %s2381_s19, %s2382_s20  }
  0x14   :  { %s2383_s23 = smov [#allocation8]   ;;  %s2384_s25 = smov [#allocation2]  }
  0x15   :  { %s63_s24 = sshll.u32 %s2383_s23, 4  ;;  %s23_s26 = sshll.u32 %s2384_s25, 4  ;;  %s64_s24 = int_to_ptr.vmem [resolvable:$true] %s63_s24  ;;  %s24_s26 = int_to_ptr.vmem [resolvable:$true] %s23_s26 }
  0x16   :  { %s2262_s29 = scalar_lea.hbm %s2564_s5, 4096 }
  0x17   :  { %p2263_p8 = scmp.ne.s32.totalorder %s2564_s5, %s2262_s29  ;;  %p2266_p9 = scmp.lt.u32.totalorder %s2262_s29, %s2564_s5 }
  0x19   :  { %p2268_p10 = pnand %p2266_p9, %p2263_p8 }
  0x1b   :  { %2271 = shalt.err (!%p2268_p10)
}
  0x1c   :  { %s2272_s1 = scalar_lea.vmem %s64_s24, 4096  ;;  %p2277_p12 = scmp.lt.s32.totalorder %s64_s24, %s64_s24 }
  0x1d   :  { %p2273_p11 = scmp.ne.s32.totalorder %s64_s24, %s2272_s1  ;;  %p2278_p13 = scmp.lt.s32.totalorder %s2272_s1, %s2272_s1 }
  0x1f   :  { %p2279_p0 = por %p2278_p13, %p2277_p12 }
  0x21   :  { %p2280_p1 = pnand %p2279_p0, %p2273_p11 }
  0x23   :  { %2283 = shalt.err (!%p2280_p1)
}
  0x24   :  { %69 = dma.hbm_to_vmem [thread:$0]  %s2564_s5, 4096, %s64_s24, [#allocation9], %s2381_s19, %s2381_s19, %s2382_s20  }
  0x25   :  { %s2284_s17 = scalar_lea.hbm %s2559_s0, 1536 }
  0x26   :  { %p2285_p2 = scmp.ne.s32.totalorder %s2559_s0, %s2284_s17  ;;  %p2288_p3 = scmp.lt.u32.totalorder %s2284_s17, %s2559_s0 }
  0x28   :  { %p2290_p4 = pnand %p2288_p3, %p2285_p2 }
  0x2a   :  { %2293 = shalt.err (!%p2290_p4)
}
  0x2b   :  { %s2294_s25 = scalar_lea.vmem %s24_s26, 1536  ;;  %p2299_p6 = scmp.lt.s32.totalorder %s24_s26, %s24_s26 }
  0x2c   :  { %p2295_p5 = scmp.ne.s32.totalorder %s24_s26, %s2294_s25  ;;  %p2300_p7 = scmp.lt.s32.totalorder %s2294_s25, %s2294_s25 }
  0x2e   :  { %p2301_p8 = por %p2300_p7, %p2299_p6 }
  0x30   :  { %p2302_p9 = pnand %p2301_p8, %p2295_p5 }
  0x32   :  { %2305 = shalt.err (!%p2302_p9)
}
  0x33   :  { %s2385_s5 = smov 512   ;;  %s2386_s24 = smov 32  }
  0x34   :  { %29 = dma.hbm_to_vmem [thread:$0]  %s2559_s0, 1536, %s24_s26, [#allocation3], %s2385_s5, %s2385_s5, %s2386_s24  }
  0x35   :  { %s2387_s29 = smov [#allocation7]   ;;  %s2388_s11 = smov [#allocation10]  }
  0x36   :  { %s49_s30 = sshll.u32 %s2387_s29, 4  ;;  %s77_s12 = sshll.u32 %s2388_s11, 4  ;;  %s50_s30 = int_to_ptr.vmem [resolvable:$true] %s49_s30  ;;  %s78_s12 = int_to_ptr.vmem [resolvable:$true] %s77_s12 }
  0x37   :  { %s2306_s10 = scalar_lea.hbm %s2562_s3, 4096 }
  0x38   :  { %p2307_p10 = scmp.ne.s32.totalorder %s2562_s3, %s2306_s10  ;;  %p2310_p11 = scmp.lt.u32.totalorder %s2306_s10, %s2562_s3 }
  0x3a   :  { %p2312_p12 = pnand %p2310_p11, %p2307_p10 }
  0x3c   :  { %2315 = shalt.err (!%p2312_p12)
}
  0x3d   :  { %s2316_s0 = scalar_lea.vmem %s50_s30, 4096  ;;  %p2321_p0 = scmp.lt.s32.totalorder %s50_s30, %s50_s30 }
  0x3e   :  { %p2317_p13 = scmp.ne.s32.totalorder %s50_s30, %s2316_s0  ;;  %p2322_p1 = scmp.lt.s32.totalorder %s2316_s0, %s2316_s0 }
  0x40   :  { %p2323_p2 = por %p2322_p1, %p2321_p0 }
  0x42   :  { %p2324_p3 = pnand %p2323_p2, %p2317_p13 }
  0x44   :  { %2327 = shalt.err (!%p2324_p3)
}
  0x45   :  { %55 = dma.hbm_to_vmem [thread:$0]  %s2562_s3, 4096, %s50_s30, [#allocation6], %s2381_s19, %s2381_s19, %s2382_s20  }
  0x46   :  { %s2328_s23 = scalar_lea.hbm %s2566_s7, 8192 }
  0x47   :  { %p2329_p4 = scmp.ne.s32.totalorder %s2566_s7, %s2328_s23  ;;  %p2332_p5 = scmp.lt.u32.totalorder %s2328_s23, %s2566_s7 }
  0x49   :  { %p2334_p6 = pnand %p2332_p5, %p2329_p4 }
  0x4b   :  { %2337 = shalt.err (!%p2334_p6)
}
  0x4c   :  { %s2338_s11 = scalar_lea.vmem %s78_s12, 8192  ;;  %p2343_p8 = scmp.lt.s32.totalorder %s78_s12, %s78_s12 }
  0x4d   :  { %p2339_p7 = scmp.ne.s32.totalorder %s78_s12, %s2338_s11  ;;  %p2344_p9 = scmp.lt.s32.totalorder %s2338_s11, %s2338_s11 }
  0x4f   :  { %p2345_p10 = por %p2344_p9, %p2343_p8 }
  0x51   :  { %p2346_p11 = pnand %p2345_p10, %p2339_p7 }
  0x53   :  { %2349 = shalt.err (!%p2346_p11)
}
  0x54   :  { %s2389_s3 = smov 256   ;;  %s2390_s19 = smov 16  }
  0x55   :  { %83 = dma.hbm_to_vmem [thread:$0]  %s2566_s7, 8192, %s78_s12, [#allocation9], %s2389_s3, %s2389_s3, %s2390_s19  }
  0x56   :  { %2372 = dma.done.wait [#allocation3], 1536  }
  0x57   :  { %2373 = vsyncadd [#allocation3], 4294965760 }
  0x58   :  { %2374 = dma.done.wait [#allocation6], 12288  }
  0x59   :  { %2375 = vsyncadd [#allocation6], 4294955008 }
  0x5a   :  { %2376 = dma.done.wait [#allocation9], 12288  }
  0x5b   :  { %2377 = vsyncadd [#allocation9], 4294955008  ;;  %v1928_v0 = vld [vmem:[#allocation5 + $0x4] ss:$8 sps:$4 sm:$0xff]   ;;  %v1930_v1 = vld [vmem:[#allocation5] ss:$8 sps:$4 sm:$0xff]  }
  0x5c   :  { %517 = vmatprep.subr.bf16.mxu0 %v1928_v0  ;;  %v1931_v2 = vld [vmem:[#allocation5 + $0x14] ss:$8 sps:$4 sm:$0xff]   ;;  %v1933_v3 = vld [vmem:[#allocation5 + $0x10] ss:$8 sps:$4 sm:$0xff]   ;;  %v1934_v4 = vld [vmem:[#allocation5 + $0x24] ss:$8 sps:$4 sm:$0xff]  }
  0x5d   :  { %518 = vmatpush1.bf16.msra.mxu0 %v1930_v1  ;;  %v1936_v5 = vld [vmem:[#allocation5 + $0x20] ss:$8 sps:$4 sm:$0xff]   ;;  %v1937_v6 = vld [vmem:[#allocation5 + $0x34] ss:$8 sps:$4 sm:$0xff]   ;;  %v1939_v7 = vld [vmem:[#allocation5 + $0x30] ss:$8 sps:$4 sm:$0xff]  }
  0x5e   :  { %519 = vmatprep.subr.bf16.mxu0 %v1931_v2  ;;  %v1940_v8 = vld [vmem:[#allocation5 + $0x44] ss:$8 sps:$4 sm:$0xff]   ;;  %v1942_v9 = vld [vmem:[#allocation5 + $0x40] ss:$8 sps:$4 sm:$0xff]   ;;  %v1943_v10 = vld [vmem:[#allocation5 + $0x54] ss:$8 sps:$4 sm:$0xff]  }
  0x5f   :  { %v1945_v11 = vld [vmem:[#allocation5 + $0x50] ss:$8 sps:$4 sm:$0xff]   ;;  %v1946_v12 = vld [vmem:[#allocation5 + $0x64] ss:$8 sps:$4 sm:$0xff]   ;;  %v1948_v16 = vld [vmem:[#allocation5 + $0x60] ss:$8 sps:$4 sm:$0xff]  }
  0x60   :  { %v102_v13 = vld [vmem:[#allocation2 + $0x8] sm:$0xff]  ;;  %v1949_v17 = vld [vmem:[#allocation5 + $0x74] ss:$8 sps:$4 sm:$0xff]   ;;  %v1951_v18 = vld [vmem:[#allocation5 + $0x70] ss:$8 sps:$4 sm:$0xff]  }
  0x61   :  { %520 = vmatpush1.bf16.msra.mxu0 %v1933_v3  ;;  %v106_v14 = vld [vmem:[#allocation2 + $0x28] sm:$0xff]  ;;  %v1955_v21 = vld [vmem:[#allocation5 + $0x94] ss:$8 sps:$4 sm:$0xff]   ;;  %v1957_v22 = vld [vmem:[#allocation5 + $0x90] ss:$8 sps:$4 sm:$0xff]  }
  0x62   :  { %521 = vmatprep.subr.bf16.mxu0 %v1934_v4  ;;  %v114_v15 = vpack.c.bf16 %v106_v14, %v102_v13  ;;  %v1952_v19 = vld [vmem:[#allocation5 + $0x84] ss:$8 sps:$4 sm:$0xff]   ;;  %v1954_v20 = vld [vmem:[#allocation5 + $0x80] ss:$8 sps:$4 sm:$0xff]   ;;  %v1961_v25 = vld [vmem:[#allocation5 + $0xb4] ss:$8 sps:$4 sm:$0xff]  }
  0x63   :  { %v1958_v23 = vld [vmem:[#allocation5 + $0xa4] ss:$8 sps:$4 sm:$0xff]   ;;  %v1960_v24 = vld [vmem:[#allocation5 + $0xa0] ss:$8 sps:$4 sm:$0xff]   ;;  %v1963_v26 = vld [vmem:[#allocation5 + $0xb0] ss:$8 sps:$4 sm:$0xff]  }
  0x64   :  { %549 = vmatprep.mubr.bf16.mxu0 %v114_v15  ;;  %v1964_v27 = vld [vmem:[#allocation5 + $0xc4] ss:$8 sps:$4 sm:$0xff]   ;;  %v1966_v28 = vld [vmem:[#allocation5 + $0xc0] ss:$8 sps:$4 sm:$0xff]   ;;  %v1967_v29 = vld [vmem:[#allocation5 + $0xd4] ss:$8 sps:$4 sm:$0xff]  }
  0x65   :  { %522 = vmatpush1.bf16.msra.mxu0 %v1936_v5  ;;  %v2024_v30 = vld [vmem:[#allocation7 + $0x4] ss:$8 sps:$4 sm:$0xff]   ;;  %v2026_v31 = vld [vmem:[#allocation7] ss:$8 sps:$4 sm:$0xff]   ;;  %v2027_v32 = vld [vmem:[#allocation7 + $0x14] ss:$8 sps:$4 sm:$0xff]  }
  0x66   :  { %523 = vmatprep.subr.bf16.mxu0 %v1937_v6  ;;  %833 = vmatprep.subr.bf16.mxu1 %v2024_v30  ;;  %v2029_v33 = vld [vmem:[#allocation7 + $0x10] ss:$8 sps:$4 sm:$0xff]   ;;  %v2030_v35 = vld [vmem:[#allocation7 + $0x24] ss:$8 sps:$4 sm:$0xff]   ;;  %v2032_v37 = vld [vmem:[#allocation7 + $0x20] ss:$8 sps:$4 sm:$0xff]  }
  0x67   :  { %834 = vmatpush1.bf16.msra.mxu1 %v2026_v31  ;;  %v1969_v34 = vld [vmem:[#allocation5 + $0xd0] ss:$8 sps:$4 sm:$0xff]   ;;  %v1970_v36 = vld [vmem:[#allocation5 + $0xe4] ss:$8 sps:$4 sm:$0xff]   ;;  %v1972_v38 = vld [vmem:[#allocation5 + $0xe0] ss:$8 sps:$4 sm:$0xff]  }
  0x68   :  { %835 = vmatprep.subr.bf16.mxu1 %v2027_v32  ;;  %v2033_v39 = vld [vmem:[#allocation7 + $0x34] ss:$8 sps:$4 sm:$0xff]   ;;  %v1975_v41 = vld [vmem:[#allocation5 + $0xf0] ss:$8 sps:$4 sm:$0xff]   ;;  %v1978_v42 = vld [vmem:[#allocation5 + $0x104] ss:$8 sps:$4 sm:$0xff]  }
  0x69   :  { %524 = vmatpush1.bf16.msra.mxu0 %v1939_v7  ;;  %v1973_v40 = vld [vmem:[#allocation5 + $0xf4] ss:$8 sps:$4 sm:$0xff]   ;;  %v101_v43 = vld [vmem:[#allocation2] sm:$0xff]  ;;  %v2035_v44 = vld [vmem:[#allocation7 + $0x30] ss:$8 sps:$4 sm:$0xff]  }
  0x6a   :  { %525 = vmatprep.subr.bf16.mxu0 %v1940_v8  ;;  %v105_v45 = vld [vmem:[#allocation2 + $0x20] sm:$0xff]  ;;  %v110_v47 = vld [vmem:[#allocation2 + $0x48] sm:$0xff]  ;;  %v1981_v51 = vld [vmem:[#allocation5 + $0x114] ss:$8 sps:$4 sm:$0xff]  }
  0x6b   :  { %836 = vmatpush1.bf16.msra.mxu1 %v2029_v33  ;;  %v2036_v46 = vld [vmem:[#allocation7 + $0x44] ss:$8 sps:$4 sm:$0xff]   ;;  %v1976_v48 = vld [vmem:[#allocation5 + $0x100] ss:$8 sps:$4 sm:$0xff]   ;;  %v113_v49 = vpack.c.bf16 %v105_v45, %v101_v43  ;;  %v118_v52 = vpack.c.bf16 %v110_v47, %v110_v47  ;;  %v2039_v53 = vld [vmem:[#allocation7 + $0x54] ss:$8 sps:$4 sm:$0xff]  }
  0x6c   :  { %837 = vmatprep.subr.bf16.mxu1 %v2030_v35  ;;  %v2038_v50 = vld [vmem:[#allocation7 + $0x40] ss:$8 sps:$4 sm:$0xff]   ;;  %v2041_v54 = vld [vmem:[#allocation7 + $0x50] ss:$8 sps:$4 sm:$0xff]   ;;  %v2042_v57 = vld [vmem:[#allocation7 + $0x64] ss:$8 sps:$4 sm:$0xff]  }
  0x6d   :  { %526 = vmatpush1.bf16.msra.mxu0 %v1942_v9  ;;  %v1979_v55 = vld [vmem:[#allocation5 + $0x110] ss:$8 sps:$4 sm:$0xff]   ;;  %v109_v56 = vld [vmem:[#allocation2 + $0x40] sm:$0xff]  ;;  %v1987_v63 = vld [vmem:[#allocation5 + $0x134] ss:$8 sps:$4 sm:$0xff]  }
  0x6e   :  { %527 = vmatprep.subr.bf16.mxu0 %v1943_v10  ;;  %v1984_v58 = vld [vmem:[#allocation5 + $0x124] ss:$8 sps:$4 sm:$0xff]   ;;  %v104_v59 = vld [vmem:[#allocation2 + $0x18] sm:$0xff]  ;;  %v2044_v61 = vld [vmem:[#allocation7 + $0x60] ss:$8 sps:$4 sm:$0xff]   ;;  %v117_v0 = vpack.c.bf16 %v109_v56, %v109_v56 }
  0x6f   :  { %838 = vmatpush1.bf16.msra.mxu1 %v2032_v37  ;;  %v108_v60 = vld [vmem:[#allocation2 + $0x38] sm:$0xff]  ;;  %v1982_v62 = vld [vmem:[#allocation5 + $0x120] ss:$8 sps:$4 sm:$0xff]   ;;  %v2048_v5 = vld [vmem:[#allocation7 + $0x84] ss:$8 sps:$4 sm:$0xff]  }
  0x70   :  { %839 = vmatprep.subr.bf16.mxu1 %v2033_v39  ;;  %v2045_v1 = vld [vmem:[#allocation7 + $0x74] ss:$8 sps:$4 sm:$0xff]   ;;  %v116_v2 = vpack.c.bf16 %v108_v60, %v104_v59  ;;  %v2047_v3 = vld [vmem:[#allocation7 + $0x70] ss:$8 sps:$4 sm:$0xff]   ;;  %v1990_v6 = vld [vmem:[#allocation5 + $0x144] ss:$8 sps:$4 sm:$0xff]  }
  0x71   :  { %528 = vmatpush1.bf16.msra.mxu0 %v1945_v11  ;;  %v1985_v4 = vld [vmem:[#allocation5 + $0x130] ss:$8 sps:$4 sm:$0xff]   ;;  %v2050_v7 = vld [vmem:[#allocation7 + $0x80] ss:$8 sps:$4 sm:$0xff]   ;;  %v2051_v9 = vld [vmem:[#allocation7 + $0x94] ss:$8 sps:$4 sm:$0xff]  }
  0x72   :  { %529 = vmatprep.subr.bf16.mxu0 %v1946_v12  ;;  %v1988_v8 = vld [vmem:[#allocation5 + $0x140] ss:$8 sps:$4 sm:$0xff]   ;;  %v1993_v10 = vld [vmem:[#allocation5 + $0x154] ss:$8 sps:$4 sm:$0xff]   ;;  %v2053_v11 = vld [vmem:[#allocation7 + $0x90] ss:$8 sps:$4 sm:$0xff]  }
  0x73   :  { %840 = vmatpush1.bf16.msra.mxu1 %v2035_v44  ;;  %v1991_v12 = vld [vmem:[#allocation5 + $0x150] ss:$8 sps:$4 sm:$0xff]   ;;  %v2054_v13 = vld [vmem:[#allocation7 + $0xa4] ss:$8 sps:$4 sm:$0xff]   ;;  %v2056_v15 = vld [vmem:[#allocation7 + $0xa0] ss:$8 sps:$4 sm:$0xff]  }
  0x74   :  { %841 = vmatprep.subr.bf16.mxu1 %v2036_v46  ;;  %v1996_v14 = vld [vmem:[#allocation5 + $0x164] ss:$8 sps:$4 sm:$0xff]   ;;  %v2011_v30 = vld [vmem:[#allocation5 + $0x1b4] ss:$8 sps:$4 sm:$0xff]   ;;  %v2009_v31 = vld [vmem:[#allocation5 + $0x1b0] ss:$8 sps:$4 sm:$0xff]  }
  0x75   :  { %530 = vmatpush1.bf16.msra.mxu0 %v1948_v16  ;;  %v1994_v16 = vld [vmem:[#allocation5 + $0x160] ss:$8 sps:$4 sm:$0xff]   ;;  %v2014_v32 = vld [vmem:[#allocation5 + $0x1c4] ss:$8 sps:$4 sm:$0xff]   ;;  %v2015_v35 = vld [vmem:[#allocation5 + $0x1d0] ss:$8 sps:$4 sm:$0xff]  }
  0x76   :  { %531 = vmatprep.subr.bf16.mxu0 %v1949_v17  ;;  %v2057_v17 = vld [vmem:[#allocation7 + $0xb4] ss:$8 sps:$4 sm:$0xff]   ;;  %v2012_v33 = vld [vmem:[#allocation5 + $0x1c0] ss:$8 sps:$4 sm:$0xff]   ;;  %v2021_v39 = vld [vmem:[#allocation5 + $0x1f0] ss:$8 sps:$4 sm:$0xff]  }
  0x77   :  { %842 = vmatpush1.bf16.msra.mxu1 %v2038_v50  ;;  %v2018_v37 = vld [vmem:[#allocation5 + $0x1e0] ss:$8 sps:$4 sm:$0xff]   ;;  %v111_v45 = vld [vmem:[#allocation2 + $0x50] sm:$0xff] }
  0x78   :  { %843 = vmatprep.subr.bf16.mxu1 %v2039_v53  ;;  %v119_v46 = vpack.c.bf16 %v111_v45, %v111_v45  ;;  %v2065_v47 = vld [vmem:[#allocation7 + $0xd0] ss:$8 sps:$4 sm:$0xff]   ;;  %v2069_v50 = vld [vmem:[#allocation7 + $0xf4] ss:$8 sps:$4 sm:$0xff]   ;;  %v187_v53 = vlaneseq  ;;  %v185_v56 = vld [vmem:[%s2561_s2] sm:$0x3] }
  0x79   :  { %532 = vmatpush1.bf16.msra.mxu0 %v1951_v18  ;;  %v1999_v18 = vld [vmem:[#allocation5 + $0x174] ss:$8 sps:$4 sm:$0xff]  }
  0x7a   :  { %533 = vmatprep.subr.bf16.mxu0 %v1952_v19  ;;  %v2059_v19 = vld [vmem:[#allocation7 + $0xb0] ss:$8 sps:$4 sm:$0xff]   ;;  %v2113_v45 = vld [vmem:[#allocation8 + $0xd4] ss:$8 sps:$4 sm:$0xff]  }
  0x7b   :  { %844 = vmatpush1.bf16.msra.mxu1 %v2041_v54  ;;  %v2514_v54 = vshrl.u32 %v187_v53, 7  ;;  %v2125_v53 = vld [vmem:[#allocation10 + $0xc] ss:$16 sps:$4 sm:$0xff]  }
  0x7c   :  { %845 = vmatprep.subr.bf16.mxu1 %v2042_v57 }
  0x7d   :  { %534 = vmatpush1.bf16.msra.mxu0 %v1954_v20  ;;  %v1997_v20 = vld [vmem:[#allocation5 + $0x170] ss:$8 sps:$4 sm:$0xff]   ;;  %v2523_v57 = vsub.s32 1, %v2514_v54 }
  0x7e   :  { %535 = vmatprep.subr.bf16.mxu0 %v1955_v21  ;;  %v2060_v21 = vld [vmem:[#allocation7 + $0xc4] ss:$8 sps:$4 sm:$0xff]  }
  0x7f   :  { %846 = vmatpush1.bf16.msra.mxu1 %v2044_v61  ;;  %v194_v59 = vrot.slane %v185_v56, %v2523_v57 }
  0x80   :  { %847 = vmatprep.subr.bf16.mxu1 %v2045_v1 }
  0x81   :  { %536 = vmatpush1.bf16.msra.mxu0 %v1957_v22  ;;  %v2002_v22 = vld [vmem:[#allocation5 + $0x184] ss:$8 sps:$4 sm:$0xff]  }
  0x82   :  { %537 = vmatprep.subr.bf16.mxu0 %v1958_v23  ;;  %v2062_v23 = vld [vmem:[#allocation7 + $0xc0] ss:$8 sps:$4 sm:$0xff]  }
  0x83   :  { %848 = vmatpush1.bf16.msra.mxu1 %v2047_v3 }
  0x84   :  { %849 = vmatprep.subr.bf16.mxu1 %v2048_v5 }
  0x85   :  { %538 = vmatpush1.bf16.msra.mxu0 %v1960_v24  ;;  %v2000_v24 = vld [vmem:[#allocation5 + $0x180] ss:$8 sps:$4 sm:$0xff]  }
  0x86   :  { %539 = vmatprep.subr.bf16.mxu0 %v1961_v25  ;;  %v2063_v25 = vld [vmem:[#allocation7 + $0xd4] ss:$8 sps:$4 sm:$0xff]  }
  0x87   :  { %850 = vmatpush1.bf16.msra.mxu1 %v2050_v7 }
  0x88   :  { %851 = vmatprep.subr.bf16.mxu1 %v2051_v9 }
  0x89   :  { %540 = vmatpush1.bf16.msra.mxu0 %v1963_v26  ;;  %v2005_v26 = vld [vmem:[#allocation5 + $0x194] ss:$8 sps:$4 sm:$0xff]  }
  0x8a   :  { %541 = vmatprep.subr.bf16.mxu0 %v1964_v27  ;;  %v2003_v27 = vld [vmem:[#allocation5 + $0x190] ss:$8 sps:$4 sm:$0xff]  }
  0x8b   :  { %852 = vmatpush1.bf16.msra.mxu1 %v2053_v11  ;;  %v2072_v11 = vld [vmem:[#allocation8] ss:$8 sps:$4 sm:$0xff]  }
  0x8c   :  { %853 = vmatprep.subr.bf16.mxu1 %v2054_v13 }
  0x8d   :  { %542 = vmatpush1.bf16.msra.mxu0 %v1966_v28  ;;  %v2008_v28 = vld [vmem:[#allocation5 + $0x1a4] ss:$8 sps:$4 sm:$0xff]  }
  0x8e   :  { %543 = vmatprep.subr.bf16.mxu0 %v1967_v29  ;;  %v2006_v29 = vld [vmem:[#allocation5 + $0x1a0] ss:$8 sps:$4 sm:$0xff]  }
  0x8f   :  { %854 = vmatpush1.bf16.msra.mxu1 %v2056_v15 }
  0x90   :  { %855 = vmatprep.subr.bf16.mxu1 %v2057_v17 }
  0x91   :  { %544 = vmatpush1.bf16.msra.mxu0 %v1969_v34  ;;  %v2017_v34 = vld [vmem:[#allocation5 + $0x1d4] ss:$8 sps:$4 sm:$0xff]  }
  0x92   :  { %545 = vmatprep.subr.bf16.mxu0 %v1970_v36  ;;  %v2020_v36 = vld [vmem:[#allocation5 + $0x1e4] ss:$8 sps:$4 sm:$0xff]  }
  0x93   :  { %856 = vmatpush1.bf16.msra.mxu1 %v2059_v19  ;;  %v2075_v19 = vld [vmem:[#allocation8 + $0x10] ss:$8 sps:$4 sm:$0xff]  }
  0x94   :  { %857 = vmatprep.subr.bf16.mxu1 %v2060_v21  ;;  %v2080_v21 = vld [vmem:[#allocation8 + $0x24] ss:$8 sps:$4 sm:$0xff]  }
  0x95   :  { %546 = vmatpush1.bf16.msra.mxu0 %v1972_v38  ;;  %v2023_v38 = vld [vmem:[#allocation5 + $0x1f4] ss:$8 sps:$4 sm:$0xff]  }
  0x96   :  { %547 = vmatprep.subr.bf16.mxu0 %v1973_v40  ;;  %v103_v40 = vld [vmem:[#allocation2 + $0x10] sm:$0xff] }
  0x97   :  { %858 = vmatpush1.bf16.msra.mxu1 %v2062_v23  ;;  %v2078_v23 = vld [vmem:[#allocation8 + $0x20] ss:$8 sps:$4 sm:$0xff]  }
  0x98   :  { %859 = vmatprep.subr.bf16.mxu1 %v2063_v25  ;;  %v2083_v25 = vld [vmem:[#allocation8 + $0x34] ss:$8 sps:$4 sm:$0xff]  }
  0x99   :  { %548 = vmatpush1.bf16.msra.mxu0 %v1975_v41  ;;  %v107_v41 = vld [vmem:[#allocation2 + $0x30] sm:$0xff] }
  0x9a   :  { %568 = vmatprep.subr.bf16.mxu0 %v1978_v42  ;;  %v112_v42 = vld [vmem:[#allocation2 + $0x58] sm:$0xff]  ;;  %v115_v43 = vpack.c.bf16 %v107_v41, %v103_v40  ;;  %v2102_v40 = vld [vmem:[#allocation8 + $0xa0] ss:$8 sps:$4 sm:$0xff]  }
  0x9b   :  { %v120_v44 = vpack.c.bf16 %v112_v42, %v112_v42  ;;  %860 = vmatpush1.bf16.msra.mxu1 %v2065_v47  ;;  %v2107_v41 = vld [vmem:[#allocation8 + $0xb4] ss:$8 sps:$4 sm:$0xff]   ;;  %v2105_v42 = vld [vmem:[#allocation8 + $0xb0] ss:$8 sps:$4 sm:$0xff]   ;;  %v2116_v47 = vld [vmem:[#allocation8 + $0xe4] ss:$8 sps:$4 sm:$0xff]  }
  0x9c   :  { %550 = vmatmul.mubr.bf16.vlgmr.msra.gmra.mrb[0].mxu0 %v113_v49  ;;  %v2068_v49 = vld [vmem:[#allocation7 + $0xe0] ss:$8 sps:$4 sm:$0xff]  }
  0x9d   :  { %569 = vmatpush1.bf16.msra.mxu0 %v1976_v48  ;;  %559 = vmatprep.mubr.bf16.mxu0 %v118_v52  ;;  %v2066_v48 = vld [vmem:[#allocation7 + $0xe4] ss:$8 sps:$4 sm:$0xff]  }
  0x9e   :  { %570 = vmatprep.subr.bf16.mxu0 %v1981_v51  ;;  %861 = vmatprep.subr.bf16.mxu1 %v2066_v48  ;;  %v2071_v51 = vld [vmem:[#allocation7 + $0xf0] ss:$8 sps:$4 sm:$0xff]   ;;  %v2074_v52 = vld [vmem:[#allocation8 + $0x4] ss:$8 sps:$4 sm:$0xff]   ;;  %v2114_v48 = vld [vmem:[#allocation8 + $0xe0] ss:$8 sps:$4 sm:$0xff]  }
  0x9f   :  { %862 = vmatpush1.bf16.msra.mxu1 %v2068_v49  ;;  %v2119_v49 = vld [vmem:[#allocation8 + $0xf4] ss:$8 sps:$4 sm:$0xff]  }
  0xa0   :  { %863 = vmatprep.subr.bf16.mxu1 %v2069_v50  ;;  %v2117_v50 = vld [vmem:[#allocation8 + $0xf0] ss:$8 sps:$4 sm:$0xff]  }
  0xa1   :  { %571 = vmatpush1.bf16.msra.mxu0 %v1979_v55  ;;  %v2517_v55 = vsub.s32 0, %v2514_v54 }
  0xa2   :  { %572 = vmatprep.subr.bf16.mxu0 %v1984_v58 }
  0xa3   :  { %864 = vmatpush1.bf16.msra.mxu1 %v2071_v51  ;;  %v190_v58 = vrot.slane %v185_v56, %v2517_v55  ;;  %v2120_v51 = vld [vmem:[#allocation10] ss:$16 sps:$4 sm:$0xff]   ;;  %v2128_v56 = vld [vmem:[#allocation10 + $0x24] ss:$16 sps:$4 sm:$0xff]  }
  0xa4   :  { %560 = vmatmul.mubr.bf16.gmra.mrb[4].mxu0 %v117_v0  ;;  %1098 = vmatprep.subr.bf16.mxu1 %v2074_v52  ;;  %v2122_v52 = vld [vmem:[#allocation10 + $0x4] ss:$16 sps:$4 sm:$0xff]  }
  0xa5   :  { %573 = vmatpush1.bf16.msra.mxu0 %v1982_v62  ;;  %600 = vmatprep.mubr.bf16.mxu0 %v116_v2 }
  0xa6   :  { %574 = vmatprep.subr.bf16.mxu0 %v1987_v63 }
  0xa9   :  { %575 = vmatpush1.bf16.msra.mxu0 %v1985_v4 }
  0xaa   :  { %576 = vmatprep.subr.bf16.mxu0 %v1990_v6 }
  0xad   :  { %577 = vmatpush1.bf16.msra.mxu0 %v1988_v8 }
  0xae   :  { %578 = vmatprep.subr.bf16.mxu0 %v1993_v10 }
  0xb1   :  { %579 = vmatpush1.bf16.msra.mxu0 %v1991_v12 }
  0xb2   :  { %580 = vmatprep.subr.bf16.mxu0 %v1996_v14  ;;  %v2077_v14 = vld [vmem:[#allocation8 + $0x14] ss:$8 sps:$4 sm:$0xff]  }
  0xb5   :  { %581 = vmatpush1.bf16.msra.mxu0 %v1994_v16 }
  0xb6   :  { %582 = vmatprep.subr.bf16.mxu0 %v1999_v18 }
  0xb9   :  { %583 = vmatpush1.bf16.msra.mxu0 %v1997_v20 }
  0xba   :  { %584 = vmatprep.subr.bf16.mxu0 %v2002_v22 }
  0xbd   :  { %585 = vmatpush1.bf16.msra.mxu0 %v2000_v24 }
  0xbe   :  { %586 = vmatprep.subr.bf16.mxu0 %v2005_v26  ;;  %v2081_v26 = vld [vmem:[#allocation8 + $0x30] ss:$8 sps:$4 sm:$0xff]  }
  0xc1   :  { %587 = vmatpush1.bf16.msra.mxu0 %v2003_v27  ;;  %v2086_v27 = vld [vmem:[#allocation8 + $0x44] ss:$8 sps:$4 sm:$0xff]  }
  0xc2   :  { %588 = vmatprep.subr.bf16.mxu0 %v2008_v28  ;;  %v2084_v28 = vld [vmem:[#allocation8 + $0x40] ss:$8 sps:$4 sm:$0xff]  }
  0xc5   :  { %589 = vmatpush1.bf16.msra.mxu0 %v2006_v29  ;;  %v2089_v29 = vld [vmem:[#allocation8 + $0x54] ss:$8 sps:$4 sm:$0xff]  }
  0xc6   :  { %590 = vmatprep.subr.bf16.mxu0 %v2011_v30  ;;  %v2087_v30 = vld [vmem:[#allocation8 + $0x50] ss:$8 sps:$4 sm:$0xff]  }
  0xc9   :  { %591 = vmatpush1.bf16.msra.mxu0 %v2009_v31  ;;  %v2092_v31 = vld [vmem:[#allocation8 + $0x64] ss:$8 sps:$4 sm:$0xff]  }
  0xca   :  { %592 = vmatprep.subr.bf16.mxu0 %v2014_v32  ;;  %v2090_v32 = vld [vmem:[#allocation8 + $0x60] ss:$8 sps:$4 sm:$0xff]  }
  0xcd   :  { %593 = vmatpush1.bf16.msra.mxu0 %v2012_v33  ;;  %v2095_v33 = vld [vmem:[#allocation8 + $0x74] ss:$8 sps:$4 sm:$0xff]  }
  0xce   :  { %594 = vmatprep.subr.bf16.mxu0 %v2017_v34  ;;  %v2093_v34 = vld [vmem:[#allocation8 + $0x70] ss:$8 sps:$4 sm:$0xff]  }
  0xd1   :  { %595 = vmatpush1.bf16.msra.mxu0 %v2015_v35  ;;  %v2098_v35 = vld [vmem:[#allocation8 + $0x84] ss:$8 sps:$4 sm:$0xff]  }
  0xd2   :  { %596 = vmatprep.subr.bf16.mxu0 %v2020_v36  ;;  %v2096_v36 = vld [vmem:[#allocation8 + $0x80] ss:$8 sps:$4 sm:$0xff]  }
  0xd5   :  { %597 = vmatpush1.bf16.msra.mxu0 %v2018_v37  ;;  %v2101_v37 = vld [vmem:[#allocation8 + $0x94] ss:$8 sps:$4 sm:$0xff]  }
  0xd6   :  { %598 = vmatprep.subr.bf16.mxu0 %v2023_v38  ;;  %v2099_v38 = vld [vmem:[#allocation8 + $0x90] ss:$8 sps:$4 sm:$0xff]  }
  0xd9   :  { %599 = vmatpush1.bf16.msra.mxu0 %v2021_v39  ;;  %v2104_v39 = vld [vmem:[#allocation8 + $0xa4] ss:$8 sps:$4 sm:$0xff]  }
  0xda   :  { %1565 = vmatprep.subr.bf16.mxu0 %v2122_v52  ;;  %v2141_v52 = vld [vmem:[#allocation10 + $0x68] ss:$16 sps:$4 sm:$0xff]  }
  0xdc   :  { %601 = vmatmul.mubr.bf16.vlgmr.msra.gmra.mrb[0].mxu0 %v115_v43  ;;  %v2110_v43 = vld [vmem:[#allocation8 + $0xc4] ss:$8 sps:$4 sm:$0xff]  }
  0xdd   :  { %610 = vmatprep.mubr.bf16.mxu0 %v120_v44  ;;  %v2108_v44 = vld [vmem:[#allocation8 + $0xc0] ss:$8 sps:$4 sm:$0xff]   ;;  %1566 = vmatpush1.bf16.msra.mxu0 %v2120_v51  ;;  %v2143_v51 = vld [vmem:[#allocation10 + $0x6c] ss:$16 sps:$4 sm:$0xff]  }
  0xde   :  { %1567 = vmatprep.subr.bf16.mxu0 %v2128_v56  ;;  %v2147_v56 = vld [vmem:[#allocation10 + $0x88] ss:$16 sps:$4 sm:$0xff]  }
  0xe4   :  { %611 = vmatmul.mubr.bf16.gmra.mrb[4].mxu0 %v119_v46  ;;  %v2111_v46 = vld [vmem:[#allocation8 + $0xd0] ss:$8 sps:$4 sm:$0xff]  }
 0x1af   :  { %v602_v60 = vpop.f32.mrb[0].mxu0 }
 0x1b0   :  { %v1902_v61 = vadd.f32 %v602_v60, %v190_v58  ;;  %v604_v62 = vpop.f32.mrb[1].mxu0  ;;  %v2132_v60 = vld [vmem:[#allocation10 + $0x40] ss:$16 sps:$4 sm:$0xff]  }
 0x1b1   :  { %v1903_v63 = vadd.f32 %v604_v62, %v194_v59  ;;  %v606_v0 = vpop.f32.mrb[2].mxu0  ;;  %v2138_v62 = vld [vmem:[#allocation10 + $0x60] ss:$16 sps:$4 sm:$0xff]  }
 0x1b2   :  { %v1904_v1 = vadd.f32 %v606_v0, %v190_v58  ;;  %v608_v2 = vpop.f32.mrb[3].mxu0  ;;  %v619_v4 = vmax.f32 %v1902_v61, 0.0  ;;  %v2140_v61 = vld [vmem:[#allocation10 + $0x64] ss:$16 sps:$4 sm:$0xff]   ;;  %v2144_v0 = vld [vmem:[#allocation10 + $0x80] ss:$16 sps:$4 sm:$0xff]  }
 0x1b3   :  { %v1905_v3 = vadd.f32 %v608_v2, %v194_v59  ;;  %v620_v6 = vmax.f32 %v1903_v63, 0.0  ;;  %v2146_v63 = vld [vmem:[#allocation10 + $0x84] ss:$16 sps:$4 sm:$0xff]   ;;  %v2150_v2 = vld [vmem:[#allocation10 + $0xa0] ss:$16 sps:$4 sm:$0xff]  }
 0x1b4   :  { %v621_v5 = vmax.f32 %v1904_v1, 0.0  ;;  %v2152_v1 = vld [vmem:[#allocation10 + $0xa4] ss:$16 sps:$4 sm:$0xff]  }
 0x1b5   :  { %v622_v7 = vmax.f32 %v1905_v3, 0.0  ;;  %v2158_v3 = vld [vmem:[#allocation10 + $0xc4] ss:$16 sps:$4 sm:$0xff]  }
 0x1b6   :  { %v625_v8 = vpack.c.bf16 %v621_v5, %v619_v4  ;;  %v2156_v4 = vld [vmem:[#allocation10 + $0xc0] ss:$16 sps:$4 sm:$0xff]   ;;  %v2164_v5 = vld [vmem:[#allocation10 + $0xe4] ss:$16 sps:$4 sm:$0xff]  }
 0x1b7   :  { %v612_v9 = vpop.f32.mrb[4].mxu0  ;;  %v626_v10 = vpack.c.bf16 %v622_v7, %v620_v6  ;;  %v2162_v6 = vld [vmem:[#allocation10 + $0xe0] ss:$16 sps:$4 sm:$0xff]   ;;  %v2170_v7 = vld [vmem:[#allocation10 + $0x104] ss:$16 sps:$4 sm:$0xff]  }
 0x1b8   :  { %v1906_v12 = vadd.f32 %v612_v9, %v190_v58  ;;  %v614_v13 = vpop.f32.mrb[5].mxu0  ;;  %v2126_v58 = vld [vmem:[#allocation10 + $0x20] ss:$16 sps:$4 sm:$0xff]   ;;  %v2176_v9 = vld [vmem:[#allocation10 + $0x124] ss:$16 sps:$4 sm:$0xff]  }
 0x1b9   :  { %v1907_v15 = vadd.f32 %v614_v13, %v194_v59  ;;  %v616_v16 = vpop.f32.mrb[6].mxu0  ;;  %865 = vmatprep.mubr.bf16.mxu1 %v626_v10  ;;  %v2134_v59 = vld [vmem:[#allocation10 + $0x44] ss:$16 sps:$4 sm:$0xff]   ;;  %1568 = vmatpush1.bf16.msra.mxu0 %v2126_v58  ;;  %v2174_v10 = vld [vmem:[#allocation10 + $0x120] ss:$16 sps:$4 sm:$0xff]  }
 0x1ba   :  { %v617_v17 = vpop.f32.mrb[7].mxu0  ;;  %866 = vmatmul.mubr.bf16.vlgmr.msra.gmra.mrb[0].mxu1 %v625_v8  ;;  %v623_v20 = vmax.f32 %v1906_v12, 0.0  ;;  %1569 = vmatprep.subr.bf16.mxu0 %v2134_v59  ;;  %v2168_v8 = vld [vmem:[#allocation10 + $0x100] ss:$16 sps:$4 sm:$0xff]   ;;  %v2188_v13 = vld [vmem:[#allocation10 + $0x164] ss:$16 sps:$4 sm:$0xff]  }
 0x1bb   :  { %v624_v18 = vmax.f32 %v1907_v15, 0.0  ;;  %1099 = vmatpush1.bf16.msra.mxu1 %v2072_v11  ;;  %v2182_v11 = vld [vmem:[#allocation10 + $0x144] ss:$16 sps:$4 sm:$0xff]   ;;  %v2180_v12 = vld [vmem:[#allocation10 + $0x140] ss:$16 sps:$4 sm:$0xff]  }
 0x1bc   :  { %1100 = vmatprep.subr.bf16.mxu1 %v2077_v14  ;;  %v627_v24 = vpack.c.bf16 %v623_v20, %v623_v20  ;;  %v2186_v14 = vld [vmem:[#allocation10 + $0x160] ss:$16 sps:$4 sm:$0xff]   ;;  %v2194_v15 = vld [vmem:[#allocation10 + $0x184] ss:$16 sps:$4 sm:$0xff]   ;;  %v2155_v58 = vld [vmem:[#allocation10 + $0xac] ss:$16 sps:$4 sm:$0xff]  }
 0x1bd   :  { %v628_v22 = vpack.c.bf16 %v624_v18, %v624_v18  ;;  %1570 = vmatpush1.bf16.msra.mxu0 %v2132_v60  ;;  %v2192_v16 = vld [vmem:[#allocation10 + $0x180] ss:$16 sps:$4 sm:$0xff]   ;;  %v2200_v17 = vld [vmem:[#allocation10 + $0x1a4] ss:$16 sps:$4 sm:$0xff]   ;;  %v2153_v59 = vld [vmem:[#allocation10 + $0xa8] ss:$16 sps:$4 sm:$0xff]  }
 0x1be   :  { %1571 = vmatprep.subr.bf16.mxu0 %v2140_v61  ;;  %v2198_v18 = vld [vmem:[#allocation10 + $0x1a0] ss:$16 sps:$4 sm:$0xff]   ;;  %v2161_v60 = vld [vmem:[#allocation10 + $0xcc] ss:$16 sps:$4 sm:$0xff]   ;;  %v2159_v61 = vld [vmem:[#allocation10 + $0xc8] ss:$16 sps:$4 sm:$0xff]  }
 0x1bf   :  { %875 = vmatprep.mubr.bf16.mxu1 %v628_v22  ;;  %1101 = vmatpush1.bf16.msra.mxu1 %v2075_v19  ;;  %v661_v19 = vld [vmem:[%s2563_s4] sm:$0x3] }
 0x1c0   :  { %1102 = vmatprep.subr.bf16.mxu1 %v2080_v21  ;;  %v666_v20 = vrot.slane %v661_v19, %v2517_v55  ;;  %v670_v21 = vrot.slane %v661_v19, %v2523_v57  ;;  %v2213_v19 = vld [vmem:[#allocation10 + $0x1e8] ss:$16 sps:$4 sm:$0xff]  }
 0x1c1   :  { %1572 = vmatpush1.bf16.msra.mxu0 %v2138_v62  ;;  %v2167_v62 = vld [vmem:[#allocation10 + $0xec] ss:$16 sps:$4 sm:$0xff]  }
 0x1c2   :  { %876 = vmatmul.mubr.bf16.gmra.mrb[4].mxu1 %v627_v24  ;;  %1573 = vmatprep.subr.bf16.mxu0 %v2146_v63  ;;  %v2165_v63 = vld [vmem:[#allocation10 + $0xe8] ss:$16 sps:$4 sm:$0xff]  }
 0x1c3   :  { %1103 = vmatpush1.bf16.msra.mxu1 %v2078_v23 }
 0x1c4   :  { %1104 = vmatprep.subr.bf16.mxu1 %v2083_v25 }
 0x1c5   :  { %1574 = vmatpush1.bf16.msra.mxu0 %v2144_v0  ;;  %v2173_v0 = vld [vmem:[#allocation10 + $0x10c] ss:$16 sps:$4 sm:$0xff]  }
 0x1c6   :  { %1575 = vmatprep.subr.bf16.mxu0 %v2152_v1  ;;  %v2171_v1 = vld [vmem:[#allocation10 + $0x108] ss:$16 sps:$4 sm:$0xff]  }
 0x1c7   :  { %1105 = vmatpush1.bf16.msra.mxu1 %v2081_v26 }
 0x1c8   :  { %1106 = vmatprep.subr.bf16.mxu1 %v2086_v27 }
 0x1c9   :  { %1576 = vmatpush1.bf16.msra.mxu0 %v2150_v2  ;;  %v2179_v2 = vld [vmem:[#allocation10 + $0x12c] ss:$16 sps:$4 sm:$0xff]  }
 0x1ca   :  { %1577 = vmatprep.subr.bf16.mxu0 %v2158_v3  ;;  %v2177_v3 = vld [vmem:[#allocation10 + $0x128] ss:$16 sps:$4 sm:$0xff]  }
 0x1cb   :  { %1107 = vmatpush1.bf16.msra.mxu1 %v2084_v28 }
 0x1cc   :  { %1108 = vmatprep.subr.bf16.mxu1 %v2089_v29 }
 0x1cd   :  { %1578 = vmatpush1.bf16.msra.mxu0 %v2156_v4  ;;  %v2185_v4 = vld [vmem:[#allocation10 + $0x14c] ss:$16 sps:$4 sm:$0xff]  }
 0x1ce   :  { %1579 = vmatprep.subr.bf16.mxu0 %v2164_v5  ;;  %v2183_v5 = vld [vmem:[#allocation10 + $0x148] ss:$16 sps:$4 sm:$0xff]  }
 0x1cf   :  { %1109 = vmatpush1.bf16.msra.mxu1 %v2087_v30 }
 0x1d0   :  { %1110 = vmatprep.subr.bf16.mxu1 %v2092_v31 }
 0x1d1   :  { %1580 = vmatpush1.bf16.msra.mxu0 %v2162_v6  ;;  %v2191_v6 = vld [vmem:[#allocation10 + $0x16c] ss:$16 sps:$4 sm:$0xff]  }
 0x1d2   :  { %1581 = vmatprep.subr.bf16.mxu0 %v2170_v7  ;;  %v2189_v7 = vld [vmem:[#allocation10 + $0x168] ss:$16 sps:$4 sm:$0xff]  }
 0x1d3   :  { %1111 = vmatpush1.bf16.msra.mxu1 %v2090_v32 }
 0x1d4   :  { %1112 = vmatprep.subr.bf16.mxu1 %v2095_v33 }
 0x1d5   :  { %1582 = vmatpush1.bf16.msra.mxu0 %v2168_v8  ;;  %v2197_v8 = vld [vmem:[#allocation10 + $0x18c] ss:$16 sps:$4 sm:$0xff]  }
 0x1d6   :  { %1583 = vmatprep.subr.bf16.mxu0 %v2176_v9  ;;  %v2195_v9 = vld [vmem:[#allocation10 + $0x188] ss:$16 sps:$4 sm:$0xff]  }
 0x1d7   :  { %1113 = vmatpush1.bf16.msra.mxu1 %v2093_v34 }
 0x1d8   :  { %1114 = vmatprep.subr.bf16.mxu1 %v2098_v35 }
 0x1d9   :  { %1584 = vmatpush1.bf16.msra.mxu0 %v2174_v10  ;;  %v2203_v10 = vld [vmem:[#allocation10 + $0x1ac] ss:$16 sps:$4 sm:$0xff]  }
 0x1da   :  { %1585 = vmatprep.subr.bf16.mxu0 %v2182_v11  ;;  %v2201_v11 = vld [vmem:[#allocation10 + $0x1a8] ss:$16 sps:$4 sm:$0xff]  }
 0x1db   :  { %1115 = vmatpush1.bf16.msra.mxu1 %v2096_v36 }
 0x1dc   :  { %1116 = vmatprep.subr.bf16.mxu1 %v2101_v37  ;;  %v2123_v37 = vld [vmem:[#allocation10 + $0x8] ss:$16 sps:$4 sm:$0xff]  }
 0x1dd   :  { %1586 = vmatpush1.bf16.msra.mxu0 %v2180_v12  ;;  %v2206_v12 = vld [vmem:[#allocation10 + $0x1c4] ss:$16 sps:$4 sm:$0xff]  }
 0x1de   :  { %1587 = vmatprep.subr.bf16.mxu0 %v2188_v13  ;;  %v2209_v13 = vld [vmem:[#allocation10 + $0x1cc] ss:$16 sps:$4 sm:$0xff]  }
 0x1df   :  { %1117 = vmatpush1.bf16.msra.mxu1 %v2099_v38 }
 0x1e0   :  { %1118 = vmatprep.subr.bf16.mxu1 %v2104_v39 }
 0x1e1   :  { %1588 = vmatpush1.bf16.msra.mxu0 %v2186_v14  ;;  %v2204_v14 = vld [vmem:[#allocation10 + $0x1c0] ss:$16 sps:$4 sm:$0xff]  }
 0x1e2   :  { %1589 = vmatprep.subr.bf16.mxu0 %v2194_v15  ;;  %v2207_v15 = vld [vmem:[#allocation10 + $0x1c8] ss:$16 sps:$4 sm:$0xff]  }
 0x1e3   :  { %1119 = vmatpush1.bf16.msra.mxu1 %v2102_v40  ;;  %v2131_v40 = vld [vmem:[#allocation10 + $0x2c] ss:$16 sps:$4 sm:$0xff]  }
 0x1e4   :  { %1120 = vmatprep.subr.bf16.mxu1 %v2107_v41 }
 0x1e5   :  { %1590 = vmatpush1.bf16.msra.mxu0 %v2192_v16  ;;  %v2212_v16 = vld [vmem:[#allocation10 + $0x1e4] ss:$16 sps:$4 sm:$0xff]  }
 0x1e6   :  { %1591 = vmatprep.subr.bf16.mxu0 %v2200_v17  ;;  %v2215_v17 = vld [vmem:[#allocation10 + $0x1ec] ss:$16 sps:$4 sm:$0xff]  }
 0x1e7   :  { %1121 = vmatpush1.bf16.msra.mxu1 %v2105_v42 }
 0x1e8   :  { %1122 = vmatprep.subr.bf16.mxu1 %v2110_v43 }
 0x1e9   :  { %1592 = vmatpush1.bf16.msra.mxu0 %v2198_v18  ;;  %v2210_v18 = vld [vmem:[#allocation10 + $0x1e0] ss:$16 sps:$4 sm:$0xff]  }
 0x1ea   :  { %1593 = vmatprep.subr.bf16.mxu0 %v2206_v12 }
 0x1eb   :  { %1123 = vmatpush1.bf16.msra.mxu1 %v2108_v44 }
 0x1ec   :  { %1124 = vmatprep.subr.bf16.mxu1 %v2113_v45  ;;  %v2129_v45 = vld [vmem:[#allocation10 + $0x28] ss:$16 sps:$4 sm:$0xff]  }
 0x1ed   :  { %1594 = vmatpush1.bf16.msra.mxu0 %v2204_v14 }
 0x1ee   :  { %1595 = vmatprep.subr.bf16.mxu0 %v2212_v16 }
 0x1ef   :  { %1125 = vmatpush1.bf16.msra.mxu1 %v2111_v46 }
 0x1f0   :  { %1126 = vmatprep.subr.bf16.mxu1 %v2116_v47  ;;  %v2137_v47 = vld [vmem:[#allocation10 + $0x4c] ss:$16 sps:$4 sm:$0xff]  }
 0x1f1   :  { %1596 = vmatpush1.bf16.msra.mxu0 %v2210_v18 }
 0x1f3   :  { %1127 = vmatpush1.bf16.msra.mxu1 %v2114_v48 }
 0x1f4   :  { %1128 = vmatprep.subr.bf16.mxu1 %v2119_v49  ;;  %v2135_v49 = vld [vmem:[#allocation10 + $0x48] ss:$16 sps:$4 sm:$0xff]  }
 0x1f7   :  { %1129 = vmatpush1.bf16.msra.mxu1 %v2117_v50 }
 0x1f8   :  { %1616 = vmatprep.subr.bf16.mxu1 %v2125_v53  ;;  %v2149_v53 = vld [vmem:[#allocation10 + $0x8c] ss:$16 sps:$4 sm:$0xff]  }
 0x28d   :  { %v867_v22 = vpop.f32.mrb[0].mxu1 }
 0x28e   :  { %v868_v23 = vadd.f32 %v867_v22, %v666_v20  ;;  %v869_v24 = vpop.f32.mrb[1].mxu1 }
 0x28f   :  { %v870_v25 = vadd.f32 %v869_v24, %v670_v21  ;;  %v871_v26 = vpop.f32.mrb[2].mxu1 }
 0x290   :  { %v872_v27 = vadd.f32 %v871_v26, %v666_v20  ;;  %v873_v28 = vpop.f32.mrb[3].mxu1  ;;  %v884_v30 = vmax.f32 %v868_v23, 0.0 }
 0x291   :  { %v874_v29 = vadd.f32 %v873_v28, %v670_v21  ;;  %v885_v32 = vmax.f32 %v870_v25, 0.0 }
 0x292   :  { %v886_v31 = vmax.f32 %v872_v27, 0.0 }
 0x293   :  { %v887_v33 = vmax.f32 %v874_v29, 0.0 }
 0x294   :  { %v890_v34 = vpack.c.bf16 %v886_v31, %v884_v30 }
 0x295   :  { %v891_v35 = vpack.c.bf16 %v887_v33, %v885_v32  ;;  %v877_v36 = vpop.f32.mrb[4].mxu1 }
 0x296   :  { %v878_v38 = vadd.f32 %v877_v36, %v666_v20  ;;  %v879_v39 = vpop.f32.mrb[5].mxu1  ;;  %v926_v20 = vld [vmem:[%s2565_s6] sm:$0x3] }
 0x297   :  { %v880_v41 = vadd.f32 %v879_v39, %v670_v21  ;;  %v881_v42 = vpop.f32.mrb[6].mxu1  ;;  %1130 = vmatprep.mubr.bf16.mxu1 %v891_v35  ;;  %v931_v21 = vrot.slane %v926_v20, %v2517_v55  ;;  %v935_v22 = vrot.slane %v926_v20, %v2523_v57 }
 0x298   :  { %v882_v43 = vpop.f32.mrb[7].mxu1  ;;  %1131 = vmatmul.mubr.bf16.vlgmr.msra.gmra.mrb[8].mxu1 %v890_v34  ;;  %v888_v46 = vmax.f32 %v878_v38, 0.0 }
 0x299   :  { %v889_v44 = vmax.f32 %v880_v41, 0.0  ;;  %1617 = vmatpush1.bf16.msra.mxu1 %v2123_v37 }
 0x29a   :  { %1618 = vmatprep.subr.bf16.mxu1 %v2131_v40  ;;  %v892_v50 = vpack.c.bf16 %v888_v46, %v888_v46 }
 0x29b   :  { %v893_v48 = vpack.c.bf16 %v889_v44, %v889_v44 }
 0x29d   :  { %1140 = vmatprep.mubr.bf16.mxu1 %v893_v48  ;;  %1619 = vmatpush1.bf16.msra.mxu1 %v2129_v45  ;;  %v1223_v48 = vld [vmem:[%s2567_s8] sm:$0xf]  ;;  %s2391_s8 = smov [#allocation11]  }
 0x29e   :  { %1620 = vmatprep.subr.bf16.mxu1 %v2137_v47  ;;  %v1235_v47 = vsub.s32 2, %v2514_v54  ;;  %s1696_s14 = sshll.u32 %s2391_s8, 4  ;;  %s1697_s14 = int_to_ptr.vmem [resolvable:$true] %s1696_s14 }
 0x29f   :  { %s2350_s15 = scalar_lea.vmem %s1697_s14, 1536  ;;  %p2355_p13 = scmp.lt.s32.totalorder %s1697_s14, %s1697_s14 }
 0x2a0   :  { %1141 = vmatmul.mubr.bf16.gmra.mrb[12].mxu1 %v892_v50  ;;  %v1228_v50 = vrot.slane %v1223_v48, %v2517_v55  ;;  %p2351_p12 = scmp.ne.s32.totalorder %s1697_s14, %s2350_s15  ;;  %p2356_p0 = scmp.lt.s32.totalorder %s2350_s15, %s2350_s15 }
 0x2a1   :  { %1621 = vmatpush1.bf16.msra.mxu1 %v2135_v49  ;;  %v1239_v49 = vsub.s32 3, %v2514_v54 }
 0x2a2   :  { %1622 = vmatprep.subr.bf16.mxu1 %v2143_v51  ;;  %v1236_v51 = vrot.slane %v1223_v48, %v1235_v47  ;;  %p2357_p1 = por %p2356_p0, %p2355_p13 }
 0x2a4   :  { %p2358_p2 = pnand %p2357_p1, %p2351_p12 }
 0x2a5   :  { %1623 = vmatpush1.bf16.msra.mxu1 %v2141_v52  ;;  %v1232_v52 = vrot.slane %v1223_v48, %v2523_v57 }
 0x2a6   :  { %1624 = vmatprep.subr.bf16.mxu1 %v2149_v53  ;;  %v1240_v53 = vrot.slane %v1223_v48, %v1239_v49 }
 0x2a9   :  { %1625 = vmatpush1.bf16.msra.mxu1 %v2147_v56 }
 0x2aa   :  { %1626 = vmatprep.subr.bf16.mxu1 %v2155_v58 }
 0x2ad   :  { %1627 = vmatpush1.bf16.msra.mxu1 %v2153_v59 }
 0x2ae   :  { %1628 = vmatprep.subr.bf16.mxu1 %v2161_v60 }
 0x2b1   :  { %1629 = vmatpush1.bf16.msra.mxu1 %v2159_v61 }
 0x2b2   :  { %1630 = vmatprep.subr.bf16.mxu1 %v2167_v62 }
 0x2b5   :  { %1631 = vmatpush1.bf16.msra.mxu1 %v2165_v63 }
 0x2b6   :  { %1632 = vmatprep.subr.bf16.mxu1 %v2173_v0 }
 0x2b9   :  { %1633 = vmatpush1.bf16.msra.mxu1 %v2171_v1 }
 0x2ba   :  { %1634 = vmatprep.subr.bf16.mxu1 %v2179_v2 }
 0x2bd   :  { %1635 = vmatpush1.bf16.msra.mxu1 %v2177_v3 }
 0x2be   :  { %1636 = vmatprep.subr.bf16.mxu1 %v2185_v4 }
 0x2c1   :  { %1637 = vmatpush1.bf16.msra.mxu1 %v2183_v5 }
 0x2c2   :  { %1638 = vmatprep.subr.bf16.mxu1 %v2191_v6 }
 0x2c5   :  { %1639 = vmatpush1.bf16.msra.mxu1 %v2189_v7 }
 0x2c6   :  { %1640 = vmatprep.subr.bf16.mxu1 %v2197_v8 }
 0x2c9   :  { %1641 = vmatpush1.bf16.msra.mxu1 %v2195_v9 }
 0x2ca   :  { %1642 = vmatprep.subr.bf16.mxu1 %v2203_v10 }
 0x2cd   :  { %1643 = vmatpush1.bf16.msra.mxu1 %v2201_v11 }
 0x2ce   :  { %1644 = vmatprep.subr.bf16.mxu1 %v2209_v13 }
 0x2d1   :  { %1645 = vmatpush1.bf16.msra.mxu1 %v2207_v15 }
 0x2d2   :  { %1646 = vmatprep.subr.bf16.mxu1 %v2215_v17 }
 0x2d5   :  { %1647 = vmatpush1.bf16.msra.mxu1 %v2213_v19 }
 0x36b   :  { %v1132_v23 = vpop.f32.mrb[8].mxu1 }
 0x36c   :  { %v1133_v24 = vadd.f32 %v1132_v23, %v931_v21  ;;  %v1134_v25 = vpop.f32.mrb[9].mxu1 }
 0x36d   :  { %v1135_v26 = vadd.f32 %v1134_v25, %v935_v22  ;;  %v1136_v27 = vpop.f32.mrb[10].mxu1 }
 0x36e   :  { %v1137_v28 = vadd.f32 %v1136_v27, %v931_v21  ;;  %v1138_v29 = vpop.f32.mrb[11].mxu1  ;;  %v1149_v31 = vmax.f32 %v1133_v24, 0.0 }
 0x36f   :  { %v1139_v30 = vadd.f32 %v1138_v29, %v935_v22  ;;  %v1150_v33 = vmax.f32 %v1135_v26, 0.0 }
 0x370   :  { %v1151_v32 = vmax.f32 %v1137_v28, 0.0 }
 0x371   :  { %v1152_v34 = vmax.f32 %v1139_v30, 0.0 }
 0x372   :  { %v1155_v35 = vpack.c.bf16 %v1151_v32, %v1149_v31 }
 0x373   :  { %v1156_v36 = vpack.c.bf16 %v1152_v34, %v1150_v33  ;;  %v1142_v37 = vpop.f32.mrb[12].mxu1 }
 0x374   :  { %v1143_v38 = vadd.f32 %v1142_v37, %v931_v21  ;;  %v1144_v39 = vpop.f32.mrb[13].mxu1 }
 0x375   :  { %v1145_v40 = vadd.f32 %v1144_v39, %v935_v22  ;;  %v1146_v41 = vpop.f32.mrb[14].mxu1  ;;  %1597 = vmatprep.mubr.bf16.mxu0 %v1156_v36  ;;  %1648 = vmatprep.mubr.bf16.mxu1 %v1156_v36 }
 0x376   :  { %v1147_v42 = vpop.f32.mrb[15].mxu1  ;;  %1598 = vmatmul.mubr.bf16.vlgmr.msra.gmra.mrb[8].mxu0 %v1155_v35  ;;  %1649 = vmatmul.mubr.bf16.vlgmr.msra.gmra.mrb[16].mxu1 %v1155_v35  ;;  %v1153_v44 = vmax.f32 %v1143_v38, 0.0 }
 0x377   :  { %v1154_v43 = vmax.f32 %v1145_v40, 0.0 }
 0x378   :  { %v1157_v46 = vpack.c.bf16 %v1153_v44, %v1153_v44 }
 0x379   :  { %v1158_v45 = vpack.c.bf16 %v1154_v43, %v1154_v43 }
 0x37b   :  { %1607 = vmatprep.mubr.bf16.mxu0 %v1158_v45  ;;  %1658 = vmatprep.mubr.bf16.mxu1 %v1158_v45 }
 0x37e   :  { %1608 = vmatmul.mubr.bf16.gmra.mrb[12].mxu0 %v1157_v46  ;;  %1659 = vmatmul.mubr.bf16.gmra.mrb[20].mxu1 %v1157_v46 }
 0x449   :  { %v1599_v56 = vpop.f32.mrb[8].mxu0  ;;  %v1650_v58 = vpop.f32.mrb[16].mxu1 }
 0x44a   :  { %v1600_v59 = vadd.f32 %v1599_v56, %v1228_v50  ;;  %v1651_v60 = vadd.f32 %v1650_v58, %v1236_v51  ;;  %v1601_v61 = vpop.f32.mrb[9].mxu0  ;;  %v1652_v62 = vpop.f32.mrb[17].mxu1 }
 0x44b   :  { %v1602_v63 = vadd.f32 %v1601_v61, %v1232_v52  ;;  %v1653_v0 = vadd.f32 %v1652_v62, %v1240_v53  ;;  %v1603_v1 = vpop.f32.mrb[10].mxu0  ;;  %v1654_v2 = vpop.f32.mrb[18].mxu1 }
 0x44c   :  { %2216 = vtanh.f32 %v1600_v59  ;;  %v1604_v3 = vadd.f32 %v1603_v1, %v1228_v50  ;;  %v1605_v4 = vpop.f32.mrb[11].mxu0  ;;  %v1656_v54 = vpop.f32.mrb[19].mxu1  ;;  %v1655_v55 = vadd.f32 %v1654_v2, %v1236_v51 }
 0x44d   :  { %2218 = vtanh.f32 %v1651_v60  ;;  %v1606_v5 = vadd.f32 %v1605_v4, %v1232_v52  ;;  %v1657_v57 = vadd.f32 %v1656_v54, %v1240_v53 }
 0x44e   :  { %2220 = vtanh.f32 %v1602_v63 }
 0x44f   :  { %2222 = vtanh.f32 %v1653_v0 }
 0x450   :  { %2224 = vtanh.f32 %v1604_v3 }
 0x451   :  { %2226 = vtanh.f32 %v1655_v55  ;;  %v1609_v6 = vpop.f32.mrb[12].mxu0  ;;  %v1660_v7 = vpop.f32.mrb[20].mxu1 }
 0x452   :  { %2228 = vtanh.f32 %v1606_v5  ;;  %v1610_v8 = vadd.f32 %v1609_v6, %v1228_v50  ;;  %v1661_v9 = vadd.f32 %v1660_v7, %v1236_v51  ;;  %v1611_v10 = vpop.f32.mrb[13].mxu0  ;;  %v1662_v11 = vpop.f32.mrb[21].mxu1 }
 0x453   :  { %2230 = vtanh.f32 %v1657_v57  ;;  %v1612_v12 = vadd.f32 %v1611_v10, %v1232_v52  ;;  %v1663_v13 = vadd.f32 %v1662_v11, %v1240_v53  ;;  %v1613_v14 = vpop.f32.mrb[14].mxu0  ;;  %v1664_v15 = vpop.f32.mrb[22].mxu1 }
 0x454   :  { %2232 = vtanh.f32 %v1610_v8  ;;  %v1614_v16 = vpop.f32.mrb[15].mxu0  ;;  %v1665_v17 = vpop.f32.mrb[23].mxu1 }
 0x455   :  { %2234 = vtanh.f32 %v1661_v9 }
 0x456   :  { %v2217_v18 = vpop.eup %2216  ;;  %2236 = vtanh.f32 %v1612_v12 }
 0x457   :  { %v2219_v19 = vpop.eup %2218  ;;  %1679 = vst [vmem:[#allocation11] sm:$0xff] %v2217_v18  ;;  %2238 = vtanh.f32 %v1663_v13 }
 0x458   :  { %v2221_v20 = vpop.eup %2220  ;;  %1681 = vst [vmem:[#allocation11 + $0x10] sm:$0xff] %v2219_v19 }
 0x459   :  { %v2223_v21 = vpop.eup %2222  ;;  %1680 = vst [vmem:[#allocation11 + $0x8] sm:$0xff] %v2221_v20 }
 0x45a   :  { %v2225_v22 = vpop.eup %2224  ;;  %1682 = vst [vmem:[#allocation11 + $0x18] sm:$0xff] %v2223_v21 }
 0x45b   :  { %v2227_v23 = vpop.eup %2226  ;;  %1683 = vst [vmem:[#allocation11 + $0x20] sm:$0xff] %v2225_v22 }
 0x45c   :  { %v2229_v24 = vpop.eup %2228  ;;  %1685 = vst [vmem:[#allocation11 + $0x30] sm:$0xff] %v2227_v23 }
 0x45d   :  { %v2231_v25 = vpop.eup %2230  ;;  %1684 = vst [vmem:[#allocation11 + $0x28] sm:$0xff] %v2229_v24 }
 0x45e   :  { %v2233_v26 = vpop.eup %2232  ;;  %1686 = vst [vmem:[#allocation11 + $0x38] sm:$0xff] %v2231_v25 }
 0x45f   :  { %v2235_v27 = vpop.eup %2234  ;;  %1687 = vst [vmem:[#allocation11 + $0x40] sm:$0xff] %v2233_v26 }
 0x460   :  { %v2237_v28 = vpop.eup %2236  ;;  %1689 = vst [vmem:[#allocation11 + $0x50] sm:$0xff] %v2235_v27 }
 0x461   :  { %v2239_v29 = vpop.eup %2238  ;;  %1688 = vst [vmem:[#allocation11 + $0x48] sm:$0xff] %v2237_v28 }
 0x462   :  { %1690 = vst [vmem:[#allocation11 + $0x58] sm:$0xff] %v2239_v29 }
 0x463   :  { %2361 = shalt.err (!%p2358_p2)
}
 0x464   :  { %s2362_s0 = scalar_lea.hbm %s2568_s9, 1536 }
 0x465   :  { %p2363_p3 = scmp.ne.s32.totalorder %s2568_s9, %s2362_s0  ;;  %p2366_p4 = scmp.lt.u32.totalorder %s2362_s0, %s2568_s9 }
 0x467   :  { %p2368_p5 = pnand %p2366_p4, %p2363_p3 }
 0x469   :  { %2371 = shalt.err (!%p2368_p5)
}
 0x46a   :  { %1702 = dma.vmem_to_hbm [thread:$0]  %s1697_s14, 1536, %s2568_s9, [#allocation4], %s2385_s5, %s2385_s5, %s2386_s24  }
 0x46b   :  { %2378 = dma.done.wait [#allocation4], 1536  }
 0x46c   :  { %2379 = vsyncadd [#allocation4], 4294965760 }
 0x46d   :  { %1706 = vsyncpa [#allocation3], 1 }
 0x46e   :  { %1707 = vsyncpa [#allocation6], 1 }
 0x46f   :  { %1708 = vsyncpa [#allocation9], 1 }
 0x470   :  { %1709 = vsyncpa [#allocation4], 1 }

</bundles_post_ra>
